<compile_context>
chip_gen: v7x
topology: tpu7x:2x2x1
jax: 0.10.0
libtpu: 0.0.40
codegen_flags: <defaults>
</compile_context>

<pallas_src>
import functools
import math

import jax
import jax.numpy as jnp
from jax.experimental import pallas as pl
from jax.experimental.pallas import tpu as pltpu


def _round_up(x, m):
    return ((x + m - 1) // m) * m


# ---------------------------------------------------------------------------
# Kernels
# ---------------------------------------------------------------------------

def _conv1d_full_k_kernel(x_ref, w_ref, b_ref, o_ref, *, cast_bf16):
    # x_ref: (tm, nx), w_ref: (nx, tn), b_ref: (1, tn), o_ref: (tm, tn)
    lhs = x_ref[...]
    rhs = w_ref[...]
    if cast_bf16:
        lhs = lhs.astype(jnp.bfloat16)
        rhs = rhs.astype(jnp.bfloat16)
    acc = jnp.dot(lhs, rhs, preferred_element_type=jnp.float32)
    o_ref[...] = (acc + b_ref[...].astype(jnp.float32)).astype(o_ref.dtype)


def _conv1d_tiled_acc_kernel(x_ref, w_ref, b_ref, o_ref, acc_ref, *, cast_bf16):
    # Tiled-K path with f32 accumulator scratch (used when out dtype != f32).
    k = pl.program_id(2)

    @pl.when(k == 0)
    def _init():
        acc_ref[...] = jnp.zeros_like(acc_ref)

    lhs = x_ref[...]
    rhs = w_ref[...]
    if cast_bf16:
        lhs = lhs.astype(jnp.bfloat16)
        rhs = rhs.astype(jnp.bfloat16)
    acc_ref[...] += jnp.dot(lhs, rhs, preferred_element_type=jnp.float32)

    @pl.when(k == pl.num_programs(2) - 1)
    def _finalize():
        o_ref[...] = (acc_ref[...] + b_ref[...].astype(jnp.float32)).astype(o_ref.dtype)


def _conv1d_tiled_out_kernel(x_ref, w_ref, b_ref, o_ref, *, cast_bf16):
    # Tiled-K path, f32 output: accumulate directly into the VMEM-resident
    # output block — no scratch, frees tm*tn*4 bytes for bigger tiles.
    k = pl.program_id(2)
    lhs = x_ref[...]
    rhs = w_ref[...]
    if cast_bf16:
        lhs = lhs.astype(jnp.bfloat16)
        rhs = rhs.astype(jnp.bfloat16)
    part = jnp.dot(lhs, rhs, preferred_element_type=jnp.float32)

    @pl.when(k == 0)
    def _first():
        o_ref[...] = part

    @pl.when(k > 0)
    def _rest():
        o_ref[...] += part

    @pl.when(k == pl.num_programs(2) - 1)
    def _finalize():
        o_ref[...] += b_ref[...].astype(jnp.float32)


# ---------------------------------------------------------------------------
# VMEM sizing
# ---------------------------------------------------------------------------

def _vmem_budget_bytes(frac=0.8):
    cap = None
    try:
        cap = int(pltpu.get_tpu_info().vmem_capacity_bytes)
    except Exception:
        cap = None
    if not cap or cap <= 0:
        cap = 64 * 1024 * 1024  # conservative (v7x-sized) fallback
    return int(frac * cap)


def _vmem_need_full_k(tm, nx, tn, isz_x, isz_w, isz_o):
    nx_lane = _round_up(nx, 128)   # x last-dim VMEM layout padding
    nx_sub = _round_up(nx, 8)      # w second-minor VMEM layout padding
    return (2 * tm * nx_lane * isz_x     # double-buffered x block
            + 2 * nx_sub * tn * isz_w    # double-buffered w block
            + 2 * 8 * tn * 4             # bias block (sublane padded)
            + 2 * tm * tn * isz_o)       # double-buffered out block


def _vmem_need_tiled_k(tm, tk, tn, isz_x, isz_w, isz_o, use_acc):
    return (2 * tm * tk * isz_x
            + 2 * tk * tn * isz_w
            + 2 * 8 * tn * 4
            + 2 * tm * tn * isz_o
            + (tm * tn * 4 if use_acc else 0))


# ---------------------------------------------------------------------------
# pallas_call wrappers
# ---------------------------------------------------------------------------

def _full_k_call(x2d, w_p, b2d, *, tm, tn, out_dtype, cast_bf16, vmem_limit):
    M, nx = x2d.shape
    nf_p = w_p.shape[1]
    gm = pl.cdiv(M, tm)
    gn = nf_p // tn
    kernel = functools.partial(_conv1d_full_k_kernel, cast_bf16=cast_bf16)

    # v7x has two TensorCores: if there is only one row block but several N
    # blocks, lead with the nf axis so both cores get work.
    swap = (gm == 1 and gn > 1)
    if swap:
        grid = (gn, gm)
        x_map = lambda j, i: (i, 0)
        w_map = lambda j, i: (0, j)
        b_map = lambda j, i: (0, j)
        o_map = lambda j, i: (i, j)
    else:
        grid = (gm, gn)
        x_map = lambda i, j: (i, 0)
        w_map = lambda i, j: (0, j)
        b_map = lambda i, j: (0, j)
        o_map = lambda i, j: (i, j)

    isz_x = jnp.dtype(x2d.dtype).itemsize
    isz_w = jnp.dtype(w_p.dtype).itemsize
    isz_o = jnp.dtype(out_dtype).itemsize
    cost = pl.CostEstimate(
        flops=2 * M * nx * nf_p,
        transcendentals=0,
        bytes_accessed=(M * nx * isz_x * gn          # x re-fetched per N block
                        + nx * nf_p * isz_w * gm     # w re-fetched per M block
                        + nf_p * 4 * gm
                        + M * nf_p * isz_o),
    )

    return pl.pallas_call(
        kernel,
        out_shape=jax.ShapeDtypeStruct((M, nf_p), out_dtype),
        grid_spec=pltpu.PrefetchScalarGridSpec(
            num_scalar_prefetch=0,
            grid=grid,
            in_specs=[
                pl.BlockSpec((tm, nx), x_map),   # full-K x row block
                pl.BlockSpec((nx, tn), w_map),   # full-K weight column block
                pl.BlockSpec((1, tn), b_map),    # bias tile
            ],
            out_specs=pl.BlockSpec((tm, tn), o_map),
        ),
        compiler_params=pltpu.CompilerParams(
            dimension_semantics=("parallel", "parallel"),
            vmem_limit_bytes=vmem_limit,
        ),
        cost_estimate=cost,
    )(x2d, w_p, b2d)


def _tiled_k_call(x2d, w_p, b2d, *, tm, tk, tn, out_dtype, cast_bf16, vmem_limit):
    M, nx_p = x2d.shape
    nf_p = w_p.shape[1]
    gm = pl.cdiv(M, tm)
    gn = nf_p // tn
    gk = nx_p // tk

    use_acc = jnp.dtype(out_dtype) != jnp.dtype(jnp.float32)
    if use_acc:
        kernel = functools.partial(_conv1d_tiled_acc_kernel, cast_bf16=cast_bf16)
        scratch = [pltpu.VMEM((tm, tn), jnp.float32)]
    else:
        kernel = functools.partial(_conv1d_tiled_out_kernel, cast_bf16=cast_bf16)
        scratch = []

    isz_x = jnp.dtype(x2d.dtype).itemsize
    isz_w = jnp.dtype(w_p.dtype).itemsize
    isz_o = jnp.dtype(out_dtype).itemsize
    cost = pl.CostEstimate(
        flops=2 * M * nx_p * nf_p,
        transcendentals=0,
        bytes_accessed=(M * nx_p * isz_x * gn
                        + nx_p * nf_p * isz_w * gm
                        + nf_p * 4 * gm
                        + M * nf_p * isz_o),
    )

    return pl.pallas_call(
        kernel,
        out_shape=jax.ShapeDtypeStruct((M, nf_p), out_dtype),
        grid_spec=pltpu.PrefetchScalarGridSpec(
            num_scalar_prefetch=0,
            grid=(gm, gn, gk),                               # reduction axis last
            in_specs=[
                pl.BlockSpec((tm, tk), lambda i, j, k: (i, k)),
                pl.BlockSpec((tk, tn), lambda i, j, k: (k, j)),
                pl.BlockSpec((1, tn), lambda i, j, k: (0, j)),
            ],
            out_specs=pl.BlockSpec((tm, tn), lambda i, j, k: (i, j)),
            scratch_shapes=scratch,
        ),
        compiler_params=pltpu.CompilerParams(
            dimension_semantics=("parallel", "parallel", "arbitrary"),
            vmem_limit_bytes=vmem_limit,
        ),
        cost_estimate=cost,
    )(x2d, w_p, b2d)


# ---------------------------------------------------------------------------
# Forward + module wrapper
# ---------------------------------------------------------------------------

def _conv1d_forward(x, w_p, b2d, nf, *, cast_bf16=False, vmem_budget_bytes=None):
    nx = x.shape[-1]
    if w_p.shape[0] != nx:
        raise ValueError("last dim of x must equal nx")
    nf_p = w_p.shape[1]
    lead = x.shape[:-1]
    M = math.prod(lead)
    x2d = x.reshape(M, nx)
    out_dtype = x.dtype

    hw_budget = _vmem_budget_bytes()
    budget = hw_budget if vmem_budget_bytes is None else int(vmem_budget_bytes)
    vmem_limit = hw_budget  # compiler scoped-VMEM limit is always HW-derived

    isz_x = jnp.dtype(x.dtype).itemsize
    isz_w = jnp.dtype(w_p.dtype).itemsize
    isz_o = jnp.dtype(out_dtype).itemsize
    sub = {4: 8, 2: 16, 1: 32}.get(isz_x, 8)     # sublane granularity by dtype

    # N tile: single lane-dense block when nf_p is modest, else 1024-wide.
    tn = nf_p if nf_p <= 2048 else 1024
    # Row tile: HBM traffic/FLOP ~ (1/tm + 1/tn), so go big; clamp to M.
    tm_target = 2048 if budget >= 72 * 1024 * 1024 else 1024
    tm = min(tm_target, _round_up(max(M, 1), sub))

    if _vmem_need_full_k(tm, nx, tn, isz_x, isz_w, isz_o) <= budget:
        # Collapsed-K path: one K block, no accumulator, all-parallel grid.
        out2d = _full_k_call(x2d, w_p, b2d, tm=tm, tn=tn, out_dtype=out_dtype,
                             cast_bf16=cast_bf16, vmem_limit=vmem_limit)
    else:
        # Tiled-K fallback (very large nx / tight VMEM).
        if nx % 128 == 0:
            nx_p = nx
            tk = 512 if nx % 512 == 0 else (256 if nx % 256 == 0 else 128)
            x_k, w_k = x2d, w_p
        else:
            # TODO(synk): rare nx % 128 != 0 case still zero-pads K per call
            # (required for correctness of the reduction).
            tk = 512
            nx_p = _round_up(nx, tk)
            x_k = jnp.pad(x2d, ((0, 0), (0, nx_p - nx)))
            w_k = jnp.pad(w_p, ((0, nx_p - nx), (0, 0)))

        use_acc = jnp.dtype(out_dtype) != jnp.dtype(jnp.float32)
        # Shrink tk first (does not change HBM traffic), then tn, then tm.
        while _vmem_need_tiled_k(tm, tk, tn, isz_x, isz_w, isz_o, use_acc) > budget:
            if tk > 128:
                tk //= 2
            elif tn > 128 and (tn // 2) % 128 == 0 and nf_p % (tn // 2) == 0:
                tn //= 2
            elif tm > sub:
                tm = max(sub, _round_up(tm // 2, sub))
            else:
                break

        out2d = _tiled_k_call(x_k, w_k, b2d, tm=tm, tk=tk, tn=tn,
                              out_dtype=out_dtype, cast_bf16=cast_bf16,
                              vmem_limit=vmem_limit)

    if nf_p != nf:
        out2d = out2d[:, :nf]
    return out2d.reshape(*lead, nf)


def init_conv1d(key, nf, rf, nx, dtype=jnp.float32):
    """Mirror of the PyTorch module init: w ~ N(0, 0.02), b = 0."""
    if rf != 1:
        raise NotImplementedError("Conv1D only supports rf == 1")
    w = (0.02 * jax.random.normal(key, (nx, nf))).astype(dtype)
    b = jnp.zeros((nf,), dtype)
    return w, b


class Conv1DPallas:
    """Pallas-TPU Conv1D (rf == 1): y = x.reshape(-1, nx) @ w + b.

    Weight/bias are padded to the lane-dense tiled layout once at
    construction (hoisted out of the per-call hot path)."""

    def __init__(self, w, b, *, cast_to_bf16=False):
        nx, nf = w.shape
        assert b.shape == (nf,)
        self.nx, self.nf = int(nx), int(nf)
        nf_p = _round_up(self.nf, 128)
        if nf_p > 2048:
            nf_p = _round_up(self.nf, 1024)   # multiple of the 1024-wide N tile
        self.nf_p = nf_p
        w_p = w if nf_p == nf else jnp.pad(w, ((0, 0), (0, nf_p - nf)))
        b_p = b if nf_p == nf else jnp.pad(b, (0, nf_p - nf))
        if cast_to_bf16 and w_p.dtype == jnp.float32:
            w_p = w_p.astype(jnp.bfloat16)    # halves weight HBM traffic
        self.w_p = w_p
        self.b_p = b_p.reshape(1, nf_p)
        self.cast_to_bf16 = bool(cast_to_bf16)

    def __call__(self, x, *, vmem_budget_bytes=None):
        return _conv1d_forward(x, self.w_p, self.b_p, self.nf,
                               cast_bf16=self.cast_to_bf16,
                               vmem_budget_bytes=vmem_budget_bytes)


# ---------------------------------------------------------------------------
# Self-test
# ---------------------------------------------------------------------------

def _ref_conv1d(x, w, b):
    lead = x.shape[:-1]
    y = (x.reshape(-1, x.shape[-1]).astype(jnp.float32)
         @ w.astype(jnp.float32) + b.astype(jnp.float32))
    return y.reshape(*lead, w.shape[1])


if __name__ == "__main__":
    key = jax.random.PRNGKey(0)
    k1, k2, k3, k4, k5, k6 = jax.random.split(key, 6)

    # 1) Small module-consistent shapes: batch=2, seq=8, nx=32, nf=64 (full-K).
    nx, nf = 32, 64
    w, b = init_conv1d(k1, nf, 1, nx)
    x = jax.random.normal(k2, (2, 8, nx), dtype=jnp.float32)
    layer = Conv1DPallas(w, b)
    y = layer(x)
    jax.block_until_ready(y)
    assert y.shape == (2, 8, nf)
    assert jnp.allclose(y, _ref_conv1d(x, w, b), atol=1e-5, rtol=1e-5)

    # 2) Non-divisible row count (3*5=15), padded nf (160->256), nx=640 (full-K).
    nx2, nf2 = 640, 160
    w2 = (0.02 * jax.random.normal(k3, (nx2, nf2))).astype(jnp.float32)
    b2 = jnp.arange(nf2, dtype=jnp.float32) * 0.01
    x2 = jax.random.normal(k4, (3, 5, nx2), dtype=jnp.float32)
    layer2 = Conv1DPallas(w2, b2)
    y2_ref = _ref_conv1d(x2, w2, b2)
    y2 = layer2(x2)
    jax.block_until_ready(y2)
    assert y2.shape == (3, 5, nf2)
    assert jnp.allclose(y2, y2_ref, atol=1e-3, rtol=1e-3)

    # 3) Force the tiled-K path (f32 direct-accumulate, no scratch) with a
    #    tiny tile budget.
    y3 = layer2(x2, vmem_budget_bytes=256 * 1024)
    jax.block_until_ready(y3)
    assert jnp.allclose(y3, y2_ref, atol=1e-3, rtol=1e-3)

    # 4) bf16 inputs through the tiled-K accumulator-scratch kernel.
    layer4 = Conv1DPallas(w2.astype(jnp.bfloat16), b2.astype(jnp.bfloat16))
    x2_bf16 = x2.astype(jnp.bfloat16)
    y4 = layer4(x2_bf16, vmem_budget_bytes=256 * 1024)
    jax.block_until_ready(y4)
    y4_ref = _ref_conv1d(x2_bf16, w2.astype(jnp.bfloat16), b2.astype(jnp.bfloat16))
    assert jnp.allclose(y4.astype(jnp.float32), y4_ref, atol=3e-2, rtol=3e-2)

    # 5) Decode-style shape (one row block, several N blocks) -> swapped grid.
    nx5, nf5 = 128, 2304
    w5 = (0.02 * jax.random.normal(k5, (nx5, nf5))).astype(jnp.float32)
    b5 = jnp.zeros((nf5,), jnp.float32)
    x5 = jax.random.normal(k6, (2, 8, nx5), dtype=jnp.float32)
    layer5 = Conv1DPallas(w5, b5)
    y5 = layer5(x5)
    jax.block_until_ready(y5)
    assert y5.shape == (2, 8, nf5)
    assert jnp.allclose(y5, _ref_conv1d(x5, w5, b5), atol=1e-3, rtol=1e-3)

    # 6) cast_to_bf16 flag: f32 activations, bf16 MXU path, f32 accumulation.
    layer6 = Conv1DPallas(w2, b2, cast_to_bf16=True)
    y6 = layer6(x2)
    jax.block_until_ready(y6)
    assert jnp.allclose(y6, y2_ref, atol=3e-2, rtol=3e-2)

    print("KERNEL_OK")
</pallas_src>

<mosaic_0001>
module attributes {stable_mosaic.version = 11 : i64} {
  func.func @_conv1d_full_k_kernel(%arg0: i32, %arg1: i32, %arg2: memref<16x32xf32, #tpu.memory_space<vmem>>, %arg3: memref<32x128xf32, #tpu.memory_space<vmem>>, %arg4: memref<1x128xf32, #tpu.memory_space<vmem>>, %arg5: memref<16x128xf32, #tpu.memory_space<vmem>>) attributes {dimension_semantics = [#tpu.dimension_semantics<parallel>, #tpu.dimension_semantics<parallel>], iteration_bounds = array<i64: 1, 1>, scalar_prefetch = 0 : i64, scratch_operands = 0 : i64, tpu.core_type = #tpu.core_type<tc>, window_params = [{transform_indices = @transform_0, window_bounds = array<i64: 16, 32>}, {transform_indices = @transform_1, window_bounds = array<i64: 32, 128>}, {transform_indices = @transform_2, window_bounds = array<i64: 1, 128>}, {transform_indices = @transform_3, window_bounds = array<i64: 16, 128>}]} {
    %c0 = arith.constant 0 : index
    %c0_0 = arith.constant 0 : index
    %0 = vector.load %arg2[%c0, %c0_0] : memref<16x32xf32, #tpu.memory_space<vmem>>, vector<16x32xf32>
    %c0_1 = arith.constant 0 : index
    %c0_2 = arith.constant 0 : index
    %1 = vector.load %arg3[%c0_1, %c0_2] : memref<32x128xf32, #tpu.memory_space<vmem>>, vector<32x128xf32>
    %cst = arith.constant dense<0.000000e+00> : vector<16x128xf32>
    %2 = tpu.matmul %0, %1, %cst {dimension_numbers = #tpu.dot_dimension_numbers<[1], [0], [0], [1], [0, 0, 1, 1], [], []>} : vector<16x32xf32>, vector<32x128xf32>, vector<16x128xf32> -> vector<16x128xf32>
    %c0_3 = arith.constant 0 : index
    %c0_4 = arith.constant 0 : index
    %3 = vector.load %arg4[%c0_3, %c0_4] : memref<1x128xf32, #tpu.memory_space<vmem>>, vector<1x128xf32>
    %4 = vector.broadcast %3 : vector<1x128xf32> to vector<16x128xf32>
    %5 = arith.addf %2, %4 : vector<16x128xf32>
    %c0_5 = arith.constant 0 : index
    %c0_6 = arith.constant 0 : index
    %6 = vector.load %arg5[%c0_5, %c0_6] : memref<16x128xf32, #tpu.memory_space<vmem>>, vector<16x128xf32>
    tpu.vector_store %arg5[%c0_5, %c0_6], %5 {strides = array<i32>} : memref<16x128xf32, #tpu.memory_space<vmem>>, vector<16x128xf32>,
    return
  }
  func.func @transform_0(%arg0: i32, %arg1: i32) -> (i32, i32) {
    %c0_i32 = arith.constant 0 : i32
    %c0_i32_0 = arith.constant 0 : i32
    return %arg0, %c0_i32 : i32, i32
  }
  func.func @transform_1(%arg0: i32, %arg1: i32) -> (i32, i32) {
    %c0_i32 = arith.constant 0 : i32
    %c0_i32_0 = arith.constant 0 : i32
    return %c0_i32, %arg1 : i32, i32
  }
  func.func @transform_2(%arg0: i32, %arg1: i32) -> (i32, i32) {
    %c0_i32 = arith.constant 0 : i32
    %c0_i32_0 = arith.constant 0 : i32
    return %c0_i32, %arg1 : i32, i32
  }
  func.func @transform_3(%arg0: i32, %arg1: i32) -> (i32, i32) {
    %c0_i32 = arith.constant 0 : i32
    return %arg0, %arg1 : i32, i32
  }
}

</mosaic_0001>

<bundles_post_ra>
// kernel: tpu_custom_call.1
= control target key start
LH: loop header
LB: loop body
LE: loop exit
PB: predicated region body
PF: predicated region fallthrough
CT: control target
= control target key end

     0   :  { %8 = vsyncpa [#allocation3], 0  ;;  %s336_s0 = inlined_call_operand.hbm [shape: f32[16,32], index: 0, kind: input, shape index: {}]   ;;  %s337_s1 = inlined_call_operand.hbm [shape: f32[32,128], index: 1, kind: input, shape index: {}]   ;;  %s338_s2 = inlined_call_operand.vmem [shape: f32[1,128], index: 2, kind: input, shape index: {}]   ;;  %s339_s3 = inlined_call_operand.hbm [shape: f32[16,128], index: 3, kind: output, shape index: {}]  }
   0x1   :  { %9 = vsyncpa [#allocation6], 0 }
   0x2   :  { %10 = vsyncpa [#allocation4], 0  ;;  %s263_s12 = smov [#allocation2]   ;;  %s191_s16 = scalar_lea.hbm %s336_s0, 256 }
   0x3   :  { %s16_s13 = sshll.u32 %s263_s12, 4  ;;  %p192_p0 = scmp.ne.s32.totalorder %s336_s0, %s191_s16  ;;  %s17_s13 = int_to_ptr.vmem [resolvable:$true] %s16_s13 }
   0x4   :  { %p195_p1 = scmp.lt.u32.totalorder %s191_s16, %s336_s0 }
   0x6   :  { %p197_p2 = pnand %p195_p1, %p192_p0 }
   0x8   :  { %200 = shalt.err (!%p197_p2)
}
   0x9   :  { %s201_s21 = scalar_lea.vmem %s17_s13, 256  ;;  %p206_p4 = scmp.lt.s32.totalorder %s17_s13, %s17_s13 }
   0xa   :  { %p202_p3 = scmp.ne.s32.totalorder %s17_s13, %s201_s21  ;;  %p207_p5 = scmp.lt.s32.totalorder %s201_s21, %s201_s21 }
   0xc   :  { %p208_p6 = por %p207_p5, %p206_p4 }
   0xe   :  { %p209_p7 = pnand %p208_p6, %p202_p3 }
  0x10   :  { %212 = shalt.err (!%p209_p7)
}
  0x11   :  { %s264_s22 = smov 128   ;;  %s265_s23 = smov 8  }
  0x12   :  { %22 = dma.hbm_to_vmem [thread:$0]  %s336_s0, 256, %s17_s13, [#allocation3], %s264_s22, %s264_s22, %s265_s23  }
  0x13   :  { %s266_s26 = smov [#allocation5]   ;;  %s213_s30 = scalar_lea.hbm %s337_s1, 512 }
  0x14   :  { %s28_s27 = sshll.u32 %s266_s26, 4  ;;  %p214_p8 = scmp.ne.s32.totalorder %s337_s1, %s213_s30  ;;  %s29_s27 = int_to_ptr.vmem [resolvable:$true] %s28_s27 }
  0x15   :  { %p217_p9 = scmp.lt.u32.totalorder %s213_s30, %s337_s1 }
  0x17   :  { %p219_p10 = pnand %p217_p9, %p214_p8 }
  0x19   :  { %222 = shalt.err (!%p219_p10)
}
  0x1a   :  { %s223_s8 = scalar_lea.vmem %s29_s27, 512  ;;  %p228_p12 = scmp.lt.s32.totalorder %s29_s27, %s29_s27 }
  0x1b   :  { %p224_p11 = scmp.ne.s32.totalorder %s29_s27, %s223_s8  ;;  %p229_p13 = scmp.lt.s32.totalorder %s223_s8, %s223_s8 }
  0x1d   :  { %p230_p0 = por %p229_p13, %p228_p12 }
  0x1f   :  { %p231_p1 = pnand %p230_p0, %p224_p11 }
  0x21   :  { %234 = shalt.err (!%p231_p1)
}
  0x22   :  { %34 = dma.hbm_to_vmem [thread:$0]  %s337_s1, 512, %s29_s27, [#allocation6], %s264_s22, %s264_s22, %s265_s23  }
  0x23   :  { %257 = dma.done.wait [#allocation3], 256  }
  0x24   :  { %258 = vsyncadd [#allocation3], 4294967040 }
  0x25   :  { %259 = dma.done.wait [#allocation6], 512  }
  0x26   :  { %260 = vsyncadd [#allocation6], 4294966784  ;;  %vm56_vm0 = vcmask 261120   ;;  %v45_v0 = vld [vmem:[#allocation5] sm:$0xff]  ;;  %v46_v1 = vld [vmem:[#allocation5 + $0x8] sm:$0xff]  ;;  %s267_s11 = smov [#allocation7]  }
  0x27   :  { %v47_v2 = vld [vmem:[#allocation5 + $0x10] sm:$0xff]  ;;  %v178_v3 = vpack.c.bf16 %v46_v1, %v45_v0  ;;  %v48_v4 = vld [vmem:[#allocation5 + $0x18] sm:$0xff]  ;;  %s145_s12 = sshll.u32 %s267_s11, 4  ;;  %s146_s12 = int_to_ptr.vmem [resolvable:$true] %s145_s12 }
  0x28   :  { %v43_v5 = vld [vmem:[#allocation2] sm:$0xff]  ;;  %v182_v6 = vpack.c.bf16 %v48_v4, %v47_v2  ;;  %v44_v7 = vld [vmem:[#allocation2 + $0x8] sm:$0xff]  ;;  %s235_s13 = scalar_lea.vmem %s146_s12, 256  ;;  %p240_p3 = scmp.lt.s32.totalorder %s146_s12, %s146_s12 }
  0x29   :  { %175 = vmatprep.mubr.msk.f32.mxu0 %vm56_vm0, %v43_v5  ;;  %179 = vmatprep.subr.bf16.mxu0 %v178_v3  ;;  %v158_v8 = vld [vmem:[%s338_s2] ss:$0 sm:$0xff]  ;;  %p236_p2 = scmp.ne.s32.totalorder %s146_s12, %s235_s13  ;;  %p241_p4 = scmp.lt.s32.totalorder %s235_s13, %s235_s13 }
  0x2a   :  { %181 = vmatpush3.bf16.msra.mxu0 %v178_v3 }
  0x2b   :  { %183 = vmatprep.subr.bf16.mxu0 %v182_v6  ;;  %p242_p5 = por %p241_p4, %p240_p3 }
  0x2d   :  { %p243_p6 = pnand %p242_p5, %p236_p2 }
  0x2e   :  { %185 = vmatpush3.bf16.msra.mxu0 %v182_v6 }
  0x31   :  { %176 = vmatmul.mubr.msk.f32.vlgmr.msra.gmra.mrb[0].mxu0 %vm56_vm0, %v44_v7 }
 0x104   :  { %v177_v9 = vpop.f32.mrb[0].mxu0 }
 0x105   :  { %v135_v10 = vadd.f32 %v177_v9, %v158_v8  ;;  %v129_v11 = vpop.f32.mrb[1].mxu0 }
 0x106   :  { %v130_v12 = vadd.f32 %v158_v8, %v129_v11 }
 0x107   :  { %139 = vst [vmem:[#allocation7 + $0x8] sm:$0xff] %v135_v10 }
 0x108   :  { %138 = vst [vmem:[#allocation7] sm:$0xff] %v130_v12 }
 0x109   :  { %246 = shalt.err (!%p243_p6)
}
 0x10a   :  { %s247_s2 = scalar_lea.hbm %s339_s3, 256 }
 0x10b   :  { %p248_p7 = scmp.ne.s32.totalorder %s339_s3, %s247_s2  ;;  %p251_p8 = scmp.lt.u32.totalorder %s247_s2, %s339_s3 }
 0x10d   :  { %p253_p9 = pnand %p251_p8, %p248_p7 }
 0x10f   :  { %256 = shalt.err (!%p253_p9)
}
 0x110   :  { %151 = dma.vmem_to_hbm [thread:$0]  %s146_s12, 256, %s339_s3, [#allocation4], %s264_s22, %s264_s22, %s265_s23  }
 0x111   :  { %261 = dma.done.wait [#allocation4], 256  }
 0x112   :  { %262 = vsyncadd [#allocation4], 4294967040 }
 0x113   :  { %155 = vsyncpa [#allocation3], 1 }
 0x114   :  { %156 = vsyncpa [#allocation6], 1 }
 0x115   :  { %157 = vsyncpa [#allocation4], 1 }

</bundles_post_ra>
